<compile_context>
chip_gen: v7x
topology: tpu7x:2x2x1
jax: 0.10.0
libtpu: 0.0.40
codegen_flags: <defaults>
</compile_context>

<pallas_src>
import functools
import math

import jax
import jax.numpy as jnp
from jax.experimental import pallas as pl
from jax.experimental.pallas import tpu as pltpu

_EPS = 1e-5


def _round_up(a, b):
    return (a + b - 1) // b * b


def _default_bf16_act():
    """Use bf16 transcendentals only where the EUP supports them (v6e / v7x)."""
    try:
        kind = jax.devices()[0].device_kind.lower()
    except Exception:
        return False
    return any(tag in kind for tag in ("v6", "v7", "tpu7", "7x"))


def _rnn_model_kernel(x_ref, w1_ref, w234_ref, w5_ref, c_ref, out_ref, *, bf16_act):
    """Batch-on-lanes fused forward.

    Shapes (TB = batch tile, multiple of 128):
      x_ref    (din, TB)   f32/bf16, batch on lanes
      w1_ref   (64, din)   bf16
      w234_ref (160, 64)   bf16   rows [0:64]=W2, [64:128]=W3, [128:160]=W4
      w5_ref   (32, 32)    bf16
      c_ref    (64, 8)     f32    cols 0..2 = b1..b3, cols 3..4 = b4..b5 (rows 0:32),
                                  col 5 row 0 = b_fc, col 6 rows 0:32 = w_fc (BN5 folded)
      out_ref  (1, TB)     f32    lane-dense output row
    """
    c = c_ref[...]                                     # tiny resident constant slab

    def act(a):                                        # tanh: bf16 on v6e/v7x, f32 on v5e
        if bf16_act:
            return jnp.tanh(a.astype(jnp.bfloat16))
        return jnp.tanh(a).astype(jnp.bfloat16)

    def step(w, h, b):                                 # one RNN step (seq_len==1, h0==0)
        return act(jnp.dot(w, h, preferred_element_type=jnp.float32) + b)

    h = x_ref[...].astype(jnp.bfloat16)                        # (din, TB)
    h = step(w1_ref[...],          h, c[:, 0:1])               # rnn1            -> (64, TB)
    h = step(w234_ref[0:64, :],    h, c[:, 1:2])               # rnn2 (bn1 fold) -> (64, TB)
    h = step(w234_ref[64:128, :],  h, c[:, 2:3])               # rnn3 (bn2 fold) -> (64, TB)
    h = step(w234_ref[128:160, :], h, c[0:32, 3:4])            # rnn4 (bn3 fold) -> (32, TB)
    h = step(w5_ref[...],          h, c[0:32, 4:5])            # rnn5 (bn4 fold) -> (32, TB)
    # fc (32 -> 1) off the MXU: VPU broadcast-mul + sublane reduce (BN5 folded in).
    logits = jnp.sum(h.astype(jnp.float32) * c[0:32, 6:7], axis=0, keepdims=True)
    logits = logits + c[0:1, 5:6]
    out_ref[...] = jax.nn.sigmoid(logits)                      # (1, TB)


def rnn_model_forward(x, params, tile_b_max=4096, bf16_act=None):
    """x: (B, input_dim) f32 or bf16 -> (B, 1) f32 (eval-mode forward).

    x may already be bf16 (it is cast to bf16 before every MXU dot anyway);
    a bf16 producer halves the dominant HBM read.
    """
    if bf16_act is None:
        bf16_act = _default_bf16_act()
    assert tile_b_max % 128 == 0 and tile_b_max >= 128
    B, din = x.shape
    assert din == params["w1"].shape[1]

    # Batch-on-lanes: pad B up to a lane-dense (multiple-of-128) tile.
    b_pad128 = _round_up(B, 128)
    tile_b = min(tile_b_max, b_pad128)
    # Guarantee a >=2-step grid when there is enough batch: the "parallel" grid
    # axis then splits across the two v7x TensorCores (extra step is ~0.35us on
    # single-TC v5e/v6e, negligible).
    if b_pad128 > 128 and tile_b >= b_pad128:
        tile_b = _round_up((b_pad128 + 1) // 2, 128)
    b_pad = _round_up(b_pad128, tile_b)

    x_t = jnp.pad(x.T, ((0, 0), (0, b_pad - B)))       # (din, b_pad), batch on lanes
    grid = (b_pad // tile_b,)

    def resident(arr):
        # full-array block, constant index -> DMA'd once, VMEM-resident across grid
        return pl.BlockSpec(arr.shape, lambda i: (0, 0))

    out = pl.pallas_call(
        functools.partial(_rnn_model_kernel, bf16_act=bf16_act),
        out_shape=jax.ShapeDtypeStruct((1, b_pad), jnp.float32),
        grid=grid,
        in_specs=[
            pl.BlockSpec((din, tile_b), lambda i: (0, i)),
            resident(params["w1"]),
            resident(params["w234"]),
            resident(params["w5"]),
            resident(params["consts"]),
        ],
        out_specs=pl.BlockSpec((1, tile_b), lambda i: (0, i)),
        compiler_params=pltpu.CompilerParams(
            dimension_semantics=("parallel",),
        ),
    )(x_t, params["w1"], params["w234"], params["w5"], params["consts"])
    return out[0, :B].reshape(B, 1)


def make_raw_params(key, input_dim):
    """Deterministic parameters mirroring the PyTorch module (eval mode)."""
    p = {}
    ks = iter(jax.random.split(key, 64))

    def uni(k, shape, bound):
        return jax.random.uniform(k, shape, jnp.float32, -bound, bound)

    dims = [(input_dim, 64), (64, 64), (64, 64), (64, 32), (32, 32)]
    for i, (din, dh) in enumerate(dims, start=1):
        bound = 1.0 / math.sqrt(dh)
        p[f"w_ih{i}"] = uni(next(ks), (dh, din), bound)   # torch layout (hidden, input)
        p[f"b_ih{i}"] = uni(next(ks), (dh,), bound)
        p[f"b_hh{i}"] = uni(next(ks), (dh,), bound)
        # W_hh is irrelevant: h0 = 0 and seq_len = 1, so the recurrent term is b_hh only.

    def bn_stats(shape):
        gamma = jax.random.uniform(next(ks), shape, jnp.float32, 0.5, 1.5)
        beta = jax.random.uniform(next(ks), shape, jnp.float32, -0.1, 0.1)
        rmean = jax.random.uniform(next(ks), shape, jnp.float32, -0.1, 0.1)
        rvar = jax.random.uniform(next(ks), shape, jnp.float32, 0.5, 1.5)
        scale = gamma / jnp.sqrt(rvar + _EPS)
        return scale, beta - rmean * scale

    for i in range(1, 5):      # BatchNorm1d(time_steps=1): single channel -> scalar affine
        p[f"bn{i}_scale"], p[f"bn{i}_shift"] = bn_stats(())
    p["bn5_scale"], p["bn5_shift"] = bn_stats((32,))    # BatchNorm1d(32)

    bound = 1.0 / math.sqrt(32.0)
    p["w_fc"] = uni(next(ks), (1, 32), bound)
    p["b_fc"] = uni(next(ks), (1,), bound)
    return p


def fold_params(raw, input_dim):
    """Fold eval-mode BN affines into adjacent weights/biases and pack operand slabs.

    BN(i) (scalar affine, time_steps==1) sits between layer i and layer i+1:
        W_{i+1} @ (s*h + t) = (s * W_{i+1}) @ h + t * rowsum(W_{i+1}).
    BN5 (per-feature, 32 ch) folds into the fc row/bias.
    """
    ws, bs = [], []
    for i in range(1, 6):
        w = raw[f"w_ih{i}"]                            # (out, in) — kept in torch layout
        b = raw[f"b_ih{i}"] + raw[f"b_hh{i}"]
        if i >= 2:
            s, t = raw[f"bn{i-1}_scale"], raw[f"bn{i-1}_shift"]
            b = b + t * jnp.sum(w, axis=1)
            w = s * w
        ws.append(w)
        bs.append(b)

    w1 = ws[0].astype(jnp.bfloat16)                                            # (64, din)
    w234 = jnp.concatenate([ws[1], ws[2], ws[3]], axis=0).astype(jnp.bfloat16)  # (160, 64)
    w5 = ws[4].astype(jnp.bfloat16)                                            # (32, 32)

    wfc_row = raw["w_fc"][0]                           # (32,)
    s5, t5 = raw["bn5_scale"], raw["bn5_shift"]
    bfc = raw["b_fc"][0] + jnp.dot(wfc_row, t5)        # fold BN5 shift into fc bias
    wfc = wfc_row * s5                                 # fold BN5 scale into fc row

    consts = jnp.zeros((64, 8), jnp.float32)
    consts = consts.at[:, 0].set(bs[0])
    consts = consts.at[:, 1].set(bs[1])
    consts = consts.at[:, 2].set(bs[2])
    consts = consts.at[:32, 3].set(bs[3])
    consts = consts.at[:32, 4].set(bs[4])
    consts = consts.at[0, 5].set(bfc)
    consts = consts.at[:32, 6].set(wfc)

    return {"w1": w1, "w234": w234, "w5": w5, "consts": consts}


def reference_forward(x, raw):
    """Pure-JAX f32 reference of the original eval-mode forward (no folding)."""
    h = x.astype(jnp.float32)
    for i in range(1, 6):
        h = jnp.tanh(h @ raw[f"w_ih{i}"].T + raw[f"b_ih{i}"] + raw[f"b_hh{i}"])
        if i <= 4:
            h = h * raw[f"bn{i}_scale"] + raw[f"bn{i}_shift"]
    h = h * raw["bn5_scale"] + raw["bn5_shift"]
    return jax.nn.sigmoid(h @ raw["w_fc"].T + raw["b_fc"])


def fused_reference(x, params, bf16_act):
    """Pure-JAX mirror of the exact kernel math (batch-on-lanes, folded, bf16 MXU)."""
    c = params["consts"]

    def act(a):
        if bf16_act:
            return jnp.tanh(a.astype(jnp.bfloat16))
        return jnp.tanh(a).astype(jnp.bfloat16)

    def step(w, h, b):
        return act(jnp.dot(w, h, preferred_element_type=jnp.float32) + b)

    h = x.T.astype(jnp.bfloat16)
    h = step(params["w1"], h, c[:, 0:1])
    h = step(params["w234"][0:64], h, c[:, 1:2])
    h = step(params["w234"][64:128], h, c[:, 2:3])
    h = step(params["w234"][128:160], h, c[0:32, 3:4])
    h = step(params["w5"], h, c[0:32, 4:5])
    logits = jnp.sum(h.astype(jnp.float32) * c[0:32, 6:7], axis=0, keepdims=True)
    logits = logits + c[0:1, 5:6]
    return jax.nn.sigmoid(logits).T                    # (B, 1)


if __name__ == "__main__":
    # input_shape = (input_dim, time_steps); time_steps must be 1 (the module's
    # own unsqueeze/permute + BatchNorm1d(time_steps) force it).  x: (B, input_dim).
    input_dim, time_steps = 16, 1
    batch = 8

    key = jax.random.PRNGKey(0)
    kx, kp, kx2 = jax.random.split(key, 3)
    x = jax.random.normal(kx, (batch, input_dim), jnp.float32)

    raw = make_raw_params(kp, input_dim)
    params = fold_params(raw, input_dim)
    bf16_act = _default_bf16_act()

    out = jax.block_until_ready(rnn_model_forward(x, params, bf16_act=bf16_act))
    assert out.shape == (batch, 1), out.shape

    # (a) exact-math check vs a pure-JAX mirror of the fused kernel (tolerance
    #     covers transcendental-implementation differences between Mosaic/XLA).
    if not bool(jnp.allclose(out, fused_reference(x, params, bf16_act),
                             atol=1e-2, rtol=1e-2)):
        raise AssertionError("Pallas kernel output mismatch vs fused JAX reference")
    # (b) semantics check vs the original (unfolded, all-f32) eval-mode forward;
    #     tolerance loosened for bf16 MXU/tanh operands + BN-folding reassociation.
    if not bool(jnp.allclose(out, reference_forward(x, raw), atol=3e-2, rtol=3e-2)):
        raise AssertionError("Pallas kernel output mismatch vs original f32 reference")

    # exercise the multi-tile / padded-batch grid paths as well
    x2 = jax.random.normal(kx2, (300, input_dim), jnp.float32)
    out2 = jax.block_until_ready(
        rnn_model_forward(x2, params, bf16_act=bf16_act))                 # 2 x 256-wide tiles
    out3 = jax.block_until_ready(
        rnn_model_forward(x2, params, tile_b_max=128, bf16_act=bf16_act))  # 3 x 128-wide tiles
    assert out2.shape == (300, 1) and out3.shape == (300, 1)
    ref2 = fused_reference(x2, params, bf16_act)
    if not (bool(jnp.allclose(out2, ref2, atol=1e-2, rtol=1e-2))
            and bool(jnp.allclose(out3, ref2, atol=1e-2, rtol=1e-2))):
        raise AssertionError("Pallas kernel (tiled) output mismatch vs fused JAX reference")

    print("KERNEL_OK")
</pallas_src>

<mosaic_0001>
module attributes {stable_mosaic.version = 11 : i64} {
  func.func @_rnn_model_kernel(%arg0: i32, %arg1: memref<16x128xf32, #tpu.memory_space<vmem>>, %arg2: memref<64x16xbf16, #tpu.memory_space<vmem>>, %arg3: memref<160x64xbf16, #tpu.memory_space<vmem>>, %arg4: memref<32x32xbf16, #tpu.memory_space<vmem>>, %arg5: memref<64x8xf32, #tpu.memory_space<vmem>>, %arg6: memref<1x128xf32, #tpu.memory_space<vmem>>) attributes {dimension_semantics = [#tpu.dimension_semantics<parallel>], iteration_bounds = array<i64: 1>, scalar_prefetch = 0 : i64, scratch_operands = 0 : i64, tpu.core_type = #tpu.core_type<tc>, window_params = [{transform_indices = @transform_0, window_bounds = array<i64: 16, 128>}, {pipeline_mode = #tpu.pipeline_mode<synchronous>, transform_indices = @transform_1, window_bounds = array<i64: 64, 16>}, {pipeline_mode = #tpu.pipeline_mode<synchronous>, transform_indices = @transform_2, window_bounds = array<i64: 160, 64>}, {pipeline_mode = #tpu.pipeline_mode<synchronous>, transform_indices = @transform_3, window_bounds = array<i64: 32, 32>}, {pipeline_mode = #tpu.pipeline_mode<synchronous>, transform_indices = @transform_4, window_bounds = array<i64: 64, 8>}, {transform_indices = @transform_5, window_bounds = array<i64: 1, 128>}]} {
    %c0 = arith.constant 0 : index
    %c0_0 = arith.constant 0 : index
    %0 = vector.load %arg5[%c0, %c0_0] : memref<64x8xf32, #tpu.memory_space<vmem>>, vector<64x8xf32>
    %c0_1 = arith.constant 0 : index
    %c0_2 = arith.constant 0 : index
    %1 = vector.load %arg1[%c0_1, %c0_2] : memref<16x128xf32, #tpu.memory_space<vmem>>, vector<16x128xf32>
    %2 = arith.truncf %1 : vector<16x128xf32> to vector<16x128xbf16>
    %c0_3 = arith.constant 0 : index
    %c0_4 = arith.constant 0 : index
    %3 = vector.load %arg2[%c0_3, %c0_4] : memref<64x16xbf16, #tpu.memory_space<vmem>>, vector<64x16xbf16>
    %4 = vector.extract_strided_slice %0 {offsets = [0, 0], sizes = [64, 1], strides = [1, 1]} : vector<64x8xf32> to vector<64x1xf32>
    %cst = arith.constant dense<0.000000e+00> : vector<64x128xf32>
    %5 = tpu.matmul %3, %2, %cst {dimension_numbers = #tpu.dot_dimension_numbers<[1], [0], [0], [1], [0, 0, 1, 1], [], []>} : vector<64x16xbf16>, vector<16x128xbf16>, vector<64x128xf32> -> vector<64x128xf32>
    %6 = vector.broadcast %4 : vector<64x1xf32> to vector<64x128xf32>
    %7 = arith.addf %5, %6 : vector<64x128xf32>
    %8 = math.tanh %7 : vector<64x128xf32>
    %9 = arith.truncf %8 : vector<64x128xf32> to vector<64x128xbf16>
    %c0_5 = arith.constant 0 : index
    %c0_6 = arith.constant 0 : index
    %10 = vector.load %arg3[%c0_5, %c0_6] : memref<160x64xbf16, #tpu.memory_space<vmem>>, vector<64x64xbf16>
    %11 = vector.extract_strided_slice %0 {offsets = [0, 1], sizes = [64, 1], strides = [1, 1]} : vector<64x8xf32> to vector<64x1xf32>
    %cst_7 = arith.constant dense<0.000000e+00> : vector<64x128xf32>
    %12 = tpu.matmul %10, %9, %cst_7 {dimension_numbers = #tpu.dot_dimension_numbers<[1], [0], [0], [1], [0, 0, 1, 1], [], []>} : vector<64x64xbf16>, vector<64x128xbf16>, vector<64x128xf32> -> vector<64x128xf32>
    %13 = vector.broadcast %11 : vector<64x1xf32> to vector<64x128xf32>
    %14 = arith.addf %12, %13 : vector<64x128xf32>
    %15 = math.tanh %14 : vector<64x128xf32>
    %16 = arith.truncf %15 : vector<64x128xf32> to vector<64x128xbf16>
    %c64 = arith.constant 64 : index
    %c0_8 = arith.constant 0 : index
    %17 = vector.load %arg3[%c64, %c0_8] : memref<160x64xbf16, #tpu.memory_space<vmem>>, vector<64x64xbf16>
    %18 = vector.extract_strided_slice %0 {offsets = [0, 2], sizes = [64, 1], strides = [1, 1]} : vector<64x8xf32> to vector<64x1xf32>
    %cst_9 = arith.constant dense<0.000000e+00> : vector<64x128xf32>
    %19 = tpu.matmul %17, %16, %cst_9 {dimension_numbers = #tpu.dot_dimension_numbers<[1], [0], [0], [1], [0, 0, 1, 1], [], []>} : vector<64x64xbf16>, vector<64x128xbf16>, vector<64x128xf32> -> vector<64x128xf32>
    %20 = vector.broadcast %18 : vector<64x1xf32> to vector<64x128xf32>
    %21 = arith.addf %19, %20 : vector<64x128xf32>
    %22 = math.tanh %21 : vector<64x128xf32>
    %23 = arith.truncf %22 : vector<64x128xf32> to vector<64x128xbf16>
    %c128 = arith.constant 128 : index
    %c0_10 = arith.constant 0 : index
    %24 = vector.load %arg3[%c128, %c0_10] : memref<160x64xbf16, #tpu.memory_space<vmem>>, vector<32x64xbf16>
    %25 = vector.extract_strided_slice %0 {offsets = [0, 3], sizes = [32, 1], strides = [1, 1]} : vector<64x8xf32> to vector<32x1xf32>
    %cst_11 = arith.constant dense<0.000000e+00> : vector<32x128xf32>
    %26 = tpu.matmul %24, %23, %cst_11 {dimension_numbers = #tpu.dot_dimension_numbers<[1], [0], [0], [1], [0, 0, 1, 1], [], []>} : vector<32x64xbf16>, vector<64x128xbf16>, vector<32x128xf32> -> vector<32x128xf32>
    %27 = vector.broadcast %25 : vector<32x1xf32> to vector<32x128xf32>
    %28 = arith.addf %26, %27 : vector<32x128xf32>
    %29 = math.tanh %28 : vector<32x128xf32>
    %30 = arith.truncf %29 : vector<32x128xf32> to vector<32x128xbf16>
    %c0_12 = arith.constant 0 : index
    %c0_13 = arith.constant 0 : index
    %31 = vector.load %arg4[%c0_12, %c0_13] : memref<32x32xbf16, #tpu.memory_space<vmem>>, vector<32x32xbf16>
    %32 = vector.extract_strided_slice %0 {offsets = [0, 4], sizes = [32, 1], strides = [1, 1]} : vector<64x8xf32> to vector<32x1xf32>
    %cst_14 = arith.constant dense<0.000000e+00> : vector<32x128xf32>
    %33 = tpu.matmul %31, %30, %cst_14 {dimension_numbers = #tpu.dot_dimension_numbers<[1], [0], [0], [1], [0, 0, 1, 1], [], []>} : vector<32x32xbf16>, vector<32x128xbf16>, vector<32x128xf32> -> vector<32x128xf32>
    %34 = vector.broadcast %32 : vector<32x1xf32> to vector<32x128xf32>
    %35 = arith.addf %33, %34 : vector<32x128xf32>
    %36 = math.tanh %35 : vector<32x128xf32>
    %37 = arith.truncf %36 : vector<32x128xf32> to vector<32x128xbf16>
    %38 = arith.extf %37 : vector<32x128xbf16> to vector<32x128xf32>
    %39 = vector.extract_strided_slice %0 {offsets = [0, 6], sizes = [32, 1], strides = [1, 1]} : vector<64x8xf32> to vector<32x1xf32>
    %40 = vector.broadcast %39 : vector<32x1xf32> to vector<32x128xf32>
    %41 = arith.mulf %38, %40 : vector<32x128xf32>
    %cst_15 = arith.constant dense<0.000000e+00> : vector<128xf32>
    %42 = vector.multi_reduction <add>, %41, %cst_15 [0] : vector<32x128xf32> to vector<128xf32>
    %43 = vector.shape_cast %42 : vector<128xf32> to vector<1x128xf32>
    %44 = vector.extract_strided_slice %0 {offsets = [0, 5], sizes = [1, 1], strides = [1, 1]} : vector<64x8xf32> to vector<1x1xf32>
    %45 = vector.broadcast %44 : vector<1x1xf32> to vector<1x128xf32>
    %46 = arith.addf %43, %45 : vector<1x128xf32>
    %47 = arith.negf %46 : vector<1x128xf32>
    %48 = math.exp %47 : vector<1x128xf32>
    %cst_16 = arith.constant 1.000000e+00 : f32
    %49 = vector.broadcast %cst_16 : f32 to vector<1x128xf32>
    %50 = arith.addf %49, %48 : vector<1x128xf32>
    %51 = arith.divf %49, %50 : vector<1x128xf32>
    %c0_17 = arith.constant 0 : index
    %c0_18 = arith.constant 0 : index
    %52 = vector.load %arg6[%c0_17, %c0_18] : memref<1x128xf32, #tpu.memory_space<vmem>>, vector<1x128xf32>
    tpu.vector_store %arg6[%c0_17, %c0_18], %51 {strides = array<i32>} : memref<1x128xf32, #tpu.memory_space<vmem>>, vector<1x128xf32>,
    return
  }
  func.func @transform_0(%arg0: i32) -> (i32, i32) {
    %c0_i32 = arith.constant 0 : i32
    %c0_i32_0 = arith.constant 0 : i32
    return %c0_i32, %arg0 : i32, i32
  }
  func.func @transform_1(%arg0: i32) -> (i32, i32) {
    %c0_i32 = arith.constant 0 : i32
    %c0_i32_0 = arith.constant 0 : i32
    %c0_i32_1 = arith.constant 0 : i32
    return %c0_i32, %c0_i32_0 : i32, i32
  }
  func.func @transform_2(%arg0: i32) -> (i32, i32) {
    %c0_i32 = arith.constant 0 : i32
    %c0_i32_0 = arith.constant 0 : i32
    %c0_i32_1 = arith.constant 0 : i32
    return %c0_i32, %c0_i32_0 : i32, i32
  }
  func.func @transform_3(%arg0: i32) -> (i32, i32) {
    %c0_i32 = arith.constant 0 : i32
    %c0_i32_0 = arith.constant 0 : i32
    %c0_i32_1 = arith.constant 0 : i32
    return %c0_i32, %c0_i32_0 : i32, i32
  }
  func.func @transform_4(%arg0: i32) -> (i32, i32) {
    %c0_i32 = arith.constant 0 : i32
    %c0_i32_0 = arith.constant 0 : i32
    %c0_i32_1 = arith.constant 0 : i32
    return %c0_i32, %c0_i32_0 : i32, i32
  }
  func.func @transform_5(%arg0: i32) -> (i32, i32) {
    %c0_i32 = arith.constant 0 : i32
    %c0_i32_0 = arith.constant 0 : i32
    return %c0_i32, %arg0 : i32, i32
  }
}

</mosaic_0001>

<bundles_post_ra>
// kernel: tpu_custom_call.1
= control target key start
LH: loop header
LB: loop body
LE: loop exit
PB: predicated region body
PF: predicated region fallthrough
CT: control target
= control target key end

     0   :  { %vm101_vm0 = vcmask 130048   ;;  %v988_v4 = vmov 0   ;;  %s1185_s0 = inlined_call_operand.vmem [shape: f32[16,128], index: 0, kind: input, shape index: {}]   ;;  %s1186_s1 = inlined_call_operand.vmem [shape: bf16[64,16], index: 1, kind: input, shape index: {}]   ;;  %s1187_s2 = inlined_call_operand.vmem [shape: bf16[160,64], index: 2, kind: input, shape index: {}]   ;;  %s1188_s3 = inlined_call_operand.vmem [shape: bf16[32,32], index: 3, kind: input, shape index: {}]   ;;  %s1189_s4 = inlined_call_operand.vmem [shape: f32[64,8], index: 4, kind: input, shape index: {}]   ;;  %s1190_s5 = inlined_call_operand.hbm [shape: f32[1,128], index: 5, kind: output, shape index: {}]  }
   0x1   :  { %v30_v0 = vld [vmem:[%s1185_s0] sm:$0xff]  ;;  %v31_v1 = vld [vmem:[%s1185_s0 + $0x8] sm:$0xff]  ;;  %866 = vset.pattern.permute.xlu0 %v988_v4  ;;  %867 = vset.pattern.permute.xlu1 %v988_v4  ;;  %v882_v6 = vld [vmem:[%s1186_s1 + $0x10] sm:$0xff]  }
   0x2   :  { %v32_v2 = vpack.c.bf16 %v31_v1, %v30_v0  ;;  %v880_v3 = vld [vmem:[%s1186_s1] sm:$0xff]   ;;  %v881_v5 = vld [vmem:[%s1186_s1 + $0x8] sm:$0xff]   ;;  %v1051_v8 = vld [vmem:[%s1189_s4 + $0x10] sm:$0xff] }
   0x3   :  { %798 = vmatprep.mubr.msk.bf16.mxu0 %vm101_vm0, %v880_v3  ;;  %v1045_v7 = vld [vmem:[%s1189_s4] sm:$0xff]  ;;  %53 = vperm.xlu1 %867, %v1051_v8   ;;  %v1057_v9 = vld [vmem:[%s1189_s4 + $0x8] sm:$0xff]  ;;  %v1063_v10 = vld [vmem:[%s1189_s4 + $0x18] sm:$0xff] }
   0x4   :  { %796 = vmatprep.subr.bf16.mxu0 %v32_v2  ;;  %43 = vperm.xlu0 %866, %v1045_v7   ;;  %v1069_v11 = vld [vmem:[%s1189_s4 + $0x20] sm:$0xff]  ;;  %v883_v12 = vld [vmem:[%s1186_s1 + $0x18] sm:$0xff]   ;;  %v1078_v13 = vld [vmem:[%s1189_s4 + $0x28] sm:$0xff] }
   0x5   :  { %797 = vmatpush3.bf16.msra.mxu0 %v32_v2  ;;  %v1084_v14 = vld [vmem:[%s1189_s4 + $0x30] sm:$0xff]  ;;  %v1092_v15 = vld [vmem:[%s1189_s4 + $0x38] sm:$0xff] }
   0x7   :  { %58 = vperm.xlu1 %867, %v1063_v10  }
   0x8   :  { %799 = vmatmul.mubr.msk.bf16.vlgmr.msra.gmra.mrb[0].mxu0 %vm101_vm0, %v881_v5  ;;  %48 = vperm.xlu0 %866, %v1057_v9  }
   0x9   :  { %802 = vmatprep.mubr.msk.bf16.mxu0 %vm101_vm0, %v882_v6 }
   0xb   :  { %68 = vperm.xlu1 %867, %v1078_v13  }
   0xc   :  { %63 = vperm.xlu0 %866, %v1069_v11  }
  0x10   :  { %803 = vmatmul.mubr.msk.bf16.gmra.mrb[4].mxu0 %vm101_vm0, %v883_v12 }
  0x11   :  { %10 = vsyncpa [#allocation3], 0  ;;  %73 = vperm.xlu0 %866, %v1084_v14   ;;  %78 = vperm.xlu1 %867, %v1092_v15   ;;  %v884_v16 = vld [vmem:[%s1187_s2] sm:$0xff]   ;;  %vm251_vm1 = vcmask 523264   ;;  %v989_v17 = vmov 1   ;;  %v885_v54 = vld [vmem:[%s1187_s2 + $0x8] sm:$0xff]  }
  0x12   :  { %814 = vmatprep.mubr.msk.bf16.mxu1 %vm251_vm1, %v884_v16  ;;  %v886_v55 = vld [vmem:[%s1187_s2 + $0x10] sm:$0xff]   ;;  %v887_v56 = vld [vmem:[%s1187_s2 + $0x18] sm:$0xff]   ;;  %v888_v57 = vld [vmem:[%s1187_s2 + $0x20] sm:$0xff]   ;;  %v990_v58 = vmov 2   ;;  %vm611_vm2 = vcmask 261120  }
  0x13   :  { %830 = vmatprep.mubr.msk.bf16.mxu0 %vm251_vm1, %v888_v57 }
  0x15   :  { %869 = vset.pattern.permute.xlu1 %v989_v17  ;;  %868 = vset.pattern.permute.xlu0 %v989_v17 }
  0x16   :  { %204 = vperm.xlu1 %869, %v1057_v9   ;;  %200 = vperm.xlu0 %868, %v1045_v7  }
  0x1a   :  { %208 = vperm.xlu1 %869, %v1051_v8   ;;  %212 = vperm.xlu0 %868, %v1063_v10  }
  0x1e   :  { %216 = vperm.xlu1 %869, %v1069_v11   ;;  %220 = vperm.xlu0 %868, %v1078_v13  }
  0x22   :  { %224 = vperm.xlu1 %869, %v1084_v14   ;;  %228 = vperm.xlu0 %868, %v1092_v15  }
  0x26   :  { %870 = vset.pattern.permute.xlu1 %v990_v58  ;;  %871 = vset.pattern.permute.xlu0 %v990_v58 }
  0x27   :  { %350 = vperm.xlu1 %870, %v1045_v7   ;;  %354 = vperm.xlu0 %871, %v1057_v9  }
  0x2b   :  { %358 = vperm.xlu1 %870, %v1051_v8   ;;  %366 = vperm.xlu0 %871, %v1069_v11  }
  0x2f   :  { %362 = vperm.xlu1 %870, %v1063_v10   ;;  %374 = vperm.xlu0 %871, %v1084_v14  }
  0x33   :  { %370 = vperm.xlu1 %870, %v1078_v13  }
  0x37   :  { %378 = vperm.xlu1 %870, %v1092_v15  }
  0x82   :  { %v54_v19 = vpop.permute.xlu1 %53 }
  0x83   :  { %v44_v18 = vpop.permute.xlu0 %43 }
  0x86   :  { %v59_v21 = vpop.permute.xlu1 %58 }
  0x87   :  { %v49_v20 = vpop.permute.xlu0 %48 }
  0x8a   :  { %v69_v30 = vpop.permute.xlu1 %68 }
  0x8b   :  { %v64_v25 = vpop.permute.xlu0 %63 }
  0x90   :  { %v74_v32 = vpop.permute.xlu0 %73  ;;  %v79_v36 = vpop.permute.xlu1 %78 }
  0x95   :  { %v205_v59 = vpop.permute.xlu1 %204  ;;  %v201_v60 = vpop.permute.xlu0 %200 }
  0x99   :  { %v209_v61 = vpop.permute.xlu1 %208  ;;  %v213_v62 = vpop.permute.xlu0 %212 }
  0x9d   :  { %v217_v2 = vpop.permute.xlu1 %216  ;;  %v221_v11 = vpop.permute.xlu0 %220 }
  0xa1   :  { %v225_v13 = vpop.permute.xlu1 %224  ;;  %v229_v17 = vpop.permute.xlu0 %228 }
  0xdb   :  { %v800_v22 = vpop.f32.mrb[0].mxu0 }
  0xdc   :  { %v157_v23 = vadd.f32 %v800_v22, %v54_v19  ;;  %v148_v24 = vpop.f32.mrb[1].mxu0 }
  0xdd   :  { %v149_v26 = vadd.f32 %v148_v24, %v44_v18  ;;  %v801_v27 = vpop.f32.mrb[2].mxu0 }
  0xde   :  { %896 = vtanh.f32 %v157_v23  ;;  %v160_v28 = vadd.f32 %v801_v27, %v59_v21  ;;  %v151_v29 = vpop.f32.mrb[3].mxu0 }
  0xdf   :  { %898 = vtanh.f32 %v149_v26  ;;  %v152_v31 = vadd.f32 %v151_v29, %v49_v20 }
  0xe0   :  { %900 = vtanh.f32 %v160_v28 }
  0xe1   :  { %902 = vtanh.f32 %v152_v31 }
  0xe3   :  { %v804_v33 = vpop.f32.mrb[4].mxu0 }
  0xe4   :  { %v173_v34 = vadd.f32 %v804_v33, %v74_v32  ;;  %v164_v35 = vpop.f32.mrb[5].mxu0 }
  0xe5   :  { %v165_v37 = vadd.f32 %v164_v35, %v64_v25  ;;  %v805_v38 = vpop.f32.mrb[6].mxu0  ;;  %v889_v35 = vld [vmem:[%s1187_s2 + $0x28] sm:$0xff]  }
  0xe6   :  { %904 = vtanh.f32 %v173_v34  ;;  %v176_v39 = vadd.f32 %v805_v38, %v79_v36  ;;  %v167_v40 = vpop.f32.mrb[7].mxu0  ;;  %v890_v36 = vld [vmem:[%s1187_s2 + $0x30] sm:$0xff]   ;;  %v892_v38 = vld [vmem:[%s1187_s2 + $0x40] sm:$0xff]  }
  0xe7   :  { %906 = vtanh.f32 %v165_v37  ;;  %v168_v41 = vadd.f32 %v167_v40, %v69_v30  ;;  %v891_v37 = vld [vmem:[%s1187_s2 + $0x38] sm:$0xff]   ;;  %v351_v40 = vpop.permute.xlu1 %350 }
  0xe8   :  { %v897_v42 = vpop.eup %896  ;;  %908 = vtanh.f32 %v176_v39  ;;  %v991_v39 = vmov 3  }
  0xe9   :  { %v899_v43 = vpop.eup %898  ;;  %910 = vtanh.f32 %v168_v41  ;;  %873 = vset.pattern.permute.xlu1 %v991_v39  ;;  %872 = vset.pattern.permute.xlu0 %v991_v39 }
  0xea   :  { %v901_v44 = vpop.eup %900  ;;  %499 = vperm.xlu1 %873, %v1057_v9   ;;  %495 = vperm.xlu0 %872, %v1045_v7  }
  0xeb   :  { %v903_v45 = vpop.eup %902  ;;  %v188_v46 = vpack.c.bf16 %v901_v44, %v897_v42  ;;  %v359_v41 = vpop.permute.xlu1 %358 }
  0xec   :  { %v187_v47 = vpack.c.bf16 %v903_v45, %v899_v43  ;;  %v355_v42 = vpop.permute.xlu0 %354 }
  0xee   :  { %806 = vmatprep.subr.bf16.mxu1 %v187_v47  ;;  %503 = vperm.xlu1 %873, %v1051_v8  }
  0xef   :  { %807 = vmatpush3.bf16.msra.mxu1 %v187_v47  ;;  %507 = vperm.xlu0 %872, %v1063_v10   ;;  %v363_v43 = vpop.permute.xlu1 %362 }
  0xf0   :  { %v905_v48 = vpop.eup %904  ;;  %808 = vmatprep.subr.bf16.mxu1 %v188_v46  ;;  %v367_v47 = vpop.permute.xlu0 %366 }
  0xf1   :  { %v907_v49 = vpop.eup %906 }
  0xf2   :  { %v909_v50 = vpop.eup %908 }
  0xf3   :  { %v911_v51 = vpop.eup %910  ;;  %809 = vmatpush3.bf16.msra.mxu1 %v188_v46  ;;  %v190_v52 = vpack.c.bf16 %v909_v50, %v905_v48 }
  0xf4   :  { %v189_v53 = vpack.c.bf16 %v911_v51, %v907_v49 }
  0xf6   :  { %810 = vmatprep.subr.bf16.mxu1 %v189_v53 }
  0xf7   :  { %811 = vmatpush3.bf16.msra.mxu1 %v189_v53 }
  0xf8   :  { %812 = vmatprep.subr.bf16.mxu1 %v190_v52 }
  0xfb   :  { %813 = vmatpush3.bf16.msra.mxu1 %v190_v52  ;;  %v371_v52 = vpop.permute.xlu1 %370 }
  0xfe   :  { %815 = vmatmul.mubr.msk.bf16.vlgmr.msra.gmra.mrb[0].mxu1 %vm251_vm1, %v885_v54  ;;  %v375_v54 = vpop.permute.xlu0 %374 }
  0xff   :  { %818 = vmatprep.mubr.msk.bf16.mxu1 %vm251_vm1, %v886_v55  ;;  %v379_v58 = vpop.permute.xlu1 %378 }
 0x106   :  { %819 = vmatmul.mubr.msk.bf16.gmra.mrb[4].mxu1 %vm251_vm1, %v887_v56 }
 0x107   :  { %846 = vmatprep.mubr.msk.bf16.mxu1 %vm251_vm1, %v892_v38 }
 0x1d1   :  { %v816_v63 = vpop.f32.mrb[0].mxu1 }
 0x1d2   :  { %v307_v0 = vadd.f32 %v816_v63, %v209_v61  ;;  %v298_v1 = vpop.f32.mrb[1].mxu1 }
 0x1d3   :  { %v299_v3 = vadd.f32 %v298_v1, %v201_v60  ;;  %v817_v4 = vpop.f32.mrb[2].mxu1 }
 0x1d4   :  { %912 = vtanh.f32 %v307_v0  ;;  %v310_v5 = vadd.f32 %v817_v4, %v213_v62  ;;  %v301_v6 = vpop.f32.mrb[3].mxu1 }
 0x1d5   :  { %914 = vtanh.f32 %v299_v3  ;;  %v302_v12 = vadd.f32 %v301_v6, %v205_v59 }
 0x1d6   :  { %916 = vtanh.f32 %v310_v5 }
 0x1d7   :  { %918 = vtanh.f32 %v302_v12 }
 0x1d9   :  { %v820_v14 = vpop.f32.mrb[4].mxu1 }
 0x1da   :  { %v323_v15 = vadd.f32 %v820_v14, %v225_v13  ;;  %v314_v16 = vpop.f32.mrb[5].mxu1 }
 0x1db   :  { %v315_v18 = vadd.f32 %v314_v16, %v217_v2  ;;  %v821_v19 = vpop.f32.mrb[6].mxu1  ;;  %v893_v16 = vld [vmem:[%s1187_s2 + $0x48] sm:$0xff]  }
 0x1dc   :  { %920 = vtanh.f32 %v323_v15  ;;  %v326_v20 = vadd.f32 %v821_v19, %v229_v17  ;;  %v317_v21 = vpop.f32.mrb[7].mxu1  ;;  %v894_v17 = vld [vmem:[%s1188_s3] sm:$0xff]   ;;  %v993_v19 = vmov 6  }
 0x1dd   :  { %922 = vtanh.f32 %v315_v18  ;;  %v318_v22 = vadd.f32 %v317_v21, %v221_v11  ;;  %v992_v18 = vmov 4   ;;  %v500_v21 = vpop.permute.xlu1 %499 }
 0x1de   :  { %v913_v23 = vpop.eup %912  ;;  %924 = vtanh.f32 %v326_v20  ;;  %874 = vset.pattern.permute.xlu1 %v992_v18  ;;  %875 = vset.pattern.permute.xlu0 %v992_v18  ;;  %v994_v20 = vmov 5  }
 0x1df   :  { %v915_v24 = vpop.eup %914  ;;  %926 = vtanh.f32 %v318_v22  ;;  %586 = vperm.xlu1 %874, %v1045_v7   ;;  %590 = vperm.xlu0 %875, %v1057_v9   ;;  %v496_v22 = vpop.permute.xlu0 %495 }
 0x1e0   :  { %v917_v25 = vpop.eup %916 }
 0x1e1   :  { %v919_v26 = vpop.eup %918  ;;  %v338_v27 = vpack.c.bf16 %v917_v25, %v913_v23  ;;  %v504_v23 = vpop.permute.xlu1 %503 }
 0x1e2   :  { %v337_v28 = vpack.c.bf16 %v919_v26, %v915_v24 }
 0x1e3   :  { %594 = vperm.xlu1 %874, %v1051_v8   ;;  %876 = vset.pattern.permute.xlu0 %v993_v19  ;;  %v508_v25 = vpop.permute.xlu0 %507 }
 0x1e4   :  { %822 = vmatprep.subr.bf16.mxu0 %v337_v28  ;;  %678 = vperm.xlu0 %876, %v1045_v7  }
 0x1e5   :  { %823 = vmatpush3.bf16.msra.mxu0 %v337_v28 }
 0x1e6   :  { %v921_v29 = vpop.eup %920  ;;  %824 = vmatprep.subr.bf16.mxu0 %v338_v27 }
 0x1e7   :  { %v923_v30 = vpop.eup %922  ;;  %598 = vperm.xlu1 %874, %v1063_v10  }
 0x1e8   :  { %v925_v31 = vpop.eup %924  ;;  %690 = vperm.xlu0 %876, %v1063_v10  }
 0x1e9   :  { %v927_v32 = vpop.eup %926  ;;  %825 = vmatpush3.bf16.msra.mxu0 %v338_v27  ;;  %v340_v33 = vpack.c.bf16 %v925_v31, %v921_v29 }
 0x1ea   :  { %v339_v34 = vpack.c.bf16 %v927_v32, %v923_v30 }
 0x1eb   :  { %877 = vset.pattern.permute.xlu1 %v993_v19 }
 0x1ec   :  { %826 = vmatprep.subr.bf16.mxu0 %v339_v34  ;;  %682 = vperm.xlu1 %877, %v1057_v9  }
 0x1ed   :  { %827 = vmatpush3.bf16.msra.mxu0 %v339_v34  ;;  %879 = vset.pattern.permute.xlu0 %v994_v20 }
 0x1ee   :  { %828 = vmatprep.subr.bf16.mxu0 %v340_v33 }
 0x1f0   :  { %686 = vperm.xlu1 %877, %v1051_v8  }
 0x1f1   :  { %829 = vmatpush3.bf16.msra.mxu0 %v340_v33 }
 0x1f4   :  { %831 = vmatmul.mubr.msk.bf16.vlgmr.msra.gmra.mrb[8].mxu0 %vm251_vm1, %v889_v35  ;;  %878 = vset.pattern.permute.xlu1 %v994_v20  ;;  %v895_v35 = vld [vmem:[%s1188_s3 + $0x8] sm:$0xff]   ;;  %s995_s3 = smov [#allocation2]  }
 0x1f5   :  { %834 = vmatprep.mubr.msk.bf16.mxu0 %vm251_vm1, %v890_v36  ;;  %707 = vperm.xlu1 %878, %v1045_v7   ;;  %s724_s15 = sshll.u32 %s995_s3, 4  ;;  %s725_s15 = int_to_ptr.vmem [resolvable:$true] %s724_s15 }
 0x1f6   :  { %s964_s16 = scalar_lea.vmem %s725_s15, 16  ;;  %s968_s17 = scalar_lea.vmem %s725_s15, 32 }
 0x1f7   :  { %p965_p0 = scmp.ne.s32.totalorder %s725_s15, %s964_s16  ;;  %p969_p1 = scmp.lt.s32.totalorder %s725_s15, %s725_s15 }
 0x1f8   :  { %p970_p2 = scmp.lt.s32.totalorder %s968_s17, %s964_s16 }
 0x1fa   :  { %p971_p3 = por %p970_p2, %p969_p1 }
 0x1fc   :  { %835 = vmatmul.mubr.msk.bf16.gmra.mrb[12].mxu0 %vm251_vm1, %v891_v37  ;;  %p972_p4 = pnand %p971_p3, %p965_p0 }
 0x1fd   :  { %854 = vmatprep.mubr.msk.bf16.mxu0 %vm611_vm2, %v894_v17 }
 0x25e   :  { %v587_v36 = vpop.permute.xlu1 %586 }
 0x262   :  { %v595_v37 = vpop.permute.xlu1 %594 }
 0x2c7   :  { %v832_v44 = vpop.f32.mrb[8].mxu0 }
 0x2c8   :  { %v456_v45 = vadd.f32 %v832_v44, %v359_v41  ;;  %v447_v46 = vpop.f32.mrb[9].mxu0  ;;  %v591_v41 = vpop.permute.xlu0 %590 }
 0x2c9   :  { %v448_v48 = vadd.f32 %v447_v46, %v351_v40  ;;  %v833_v49 = vpop.f32.mrb[10].mxu0  ;;  %v599_v44 = vpop.permute.xlu1 %598 }
 0x2ca   :  { %928 = vtanh.f32 %v456_v45  ;;  %v459_v50 = vadd.f32 %v833_v49, %v363_v43  ;;  %v450_v51 = vpop.f32.mrb[11].mxu0 }
 0x2cb   :  { %930 = vtanh.f32 %v448_v48  ;;  %v451_v53 = vadd.f32 %v450_v51, %v355_v42 }
 0x2cc   :  { %932 = vtanh.f32 %v459_v50 }
 0x2cd   :  { %934 = vtanh.f32 %v451_v53  ;;  %v683_v50 = vpop.permute.xlu1 %682  ;;  %v679_v53 = vpop.permute.xlu0 %678 }
 0x2cf   :  { %v836_v55 = vpop.f32.mrb[12].mxu0 }
 0x2d0   :  { %v472_v56 = vadd.f32 %v836_v55, %v375_v54  ;;  %v463_v57 = vpop.f32.mrb[13].mxu0 }
 0x2d1   :  { %v464_v59 = vadd.f32 %v463_v57, %v367_v47  ;;  %v837_v60 = vpop.f32.mrb[14].mxu0 }
 0x2d2   :  { %936 = vtanh.f32 %v472_v56  ;;  %v475_v61 = vadd.f32 %v837_v60, %v379_v58  ;;  %v466_v62 = vpop.f32.mrb[15].mxu0 }
 0x2d3   :  { %938 = vtanh.f32 %v464_v59  ;;  %v467_v63 = vadd.f32 %v466_v62, %v371_v52  ;;  %v687_v59 = vpop.permute.xlu1 %686 }
 0x2d4   :  { %v929_v0 = vpop.eup %928  ;;  %940 = vtanh.f32 %v475_v61 }
 0x2d5   :  { %v931_v1 = vpop.eup %930  ;;  %942 = vtanh.f32 %v467_v63  ;;  %v691_v63 = vpop.permute.xlu0 %690 }
 0x2d6   :  { %v933_v2 = vpop.eup %932 }
 0x2d7   :  { %v935_v3 = vpop.eup %934  ;;  %v487_v4 = vpack.c.bf16 %v933_v2, %v929_v0 }
 0x2d8   :  { %v486_v5 = vpack.c.bf16 %v935_v3, %v931_v1 }
 0x2da   :  { %838 = vmatprep.subr.bf16.mxu1 %v486_v5 }
 0x2db   :  { %839 = vmatpush3.bf16.msra.mxu1 %v486_v5 }
 0x2dc   :  { %v937_v6 = vpop.eup %936  ;;  %840 = vmatprep.subr.bf16.mxu1 %v487_v4 }
 0x2dd   :  { %v939_v11 = vpop.eup %938 }
 0x2de   :  { %v941_v12 = vpop.eup %940 }
 0x2df   :  { %v943_v13 = vpop.eup %942  ;;  %841 = vmatpush3.bf16.msra.mxu1 %v487_v4  ;;  %v489_v14 = vpack.c.bf16 %v941_v12, %v937_v6 }
 0x2e0   :  { %v488_v15 = vpack.c.bf16 %v943_v13, %v939_v11 }
 0x2e2   :  { %842 = vmatprep.subr.bf16.mxu1 %v488_v15 }
 0x2e3   :  { %843 = vmatpush3.bf16.msra.mxu1 %v488_v15 }
 0x2e4   :  { %844 = vmatprep.subr.bf16.mxu1 %v489_v14 }
 0x2e7   :  { %845 = vmatpush3.bf16.msra.mxu1 %v489_v14  ;;  %v708_v14 = vpop.permute.xlu1 %707 }
 0x2ea   :  { %847 = vmatmul.mubr.msk.bf16.vlgmr.msra.gmra.mrb[8].mxu1 %vm251_vm1, %v893_v16 }
 0x3bd   :  { %v848_v24 = vpop.f32.mrb[8].mxu1 }
 0x3be   :  { %v569_v26 = vadd.f32 %v848_v24, %v504_v23  ;;  %v560_v27 = vpop.f32.mrb[9].mxu1 }
 0x3bf   :  { %v561_v28 = vadd.f32 %v560_v27, %v496_v22  ;;  %v849_v29 = vpop.f32.mrb[10].mxu1 }
 0x3c0   :  { %944 = vtanh.f32 %v569_v26  ;;  %v572_v10 = vadd.f32 %v849_v29, %v508_v25  ;;  %v563_v30 = vpop.f32.mrb[11].mxu1 }
 0x3c1   :  { %946 = vtanh.f32 %v561_v28  ;;  %v564_v9 = vadd.f32 %v563_v30, %v500_v21 }
 0x3c2   :  { %948 = vtanh.f32 %v572_v10 }
 0x3c3   :  { %950 = vtanh.f32 %v564_v9 }
 0x3ca   :  { %v945_v8 = vpop.eup %944 }
 0x3cb   :  { %v947_v31 = vpop.eup %946 }
 0x3cc   :  { %v949_v32 = vpop.eup %948 }
 0x3cd   :  { %v951_v7 = vpop.eup %950  ;;  %v580_v33 = vpack.c.bf16 %v949_v32, %v945_v8 }
 0x3ce   :  { %v579_v34 = vpack.c.bf16 %v951_v7, %v947_v31 }
 0x3d0   :  { %850 = vmatprep.subr.bf16.mxu0 %v579_v34 }
 0x3d1   :  { %851 = vmatpush3.bf16.msra.mxu0 %v579_v34 }
 0x3d2   :  { %852 = vmatprep.subr.bf16.mxu0 %v580_v33 }
 0x3d5   :  { %853 = vmatpush3.bf16.msra.mxu0 %v580_v33 }
 0x3d8   :  { %855 = vmatmul.mubr.msk.bf16.vlgmr.msra.gmra.mrb[16].mxu0 %vm611_vm2, %v895_v35 }
 0x4ab   :  { %v856_v38 = vpop.f32.mrb[16].mxu0 }
 0x4ac   :  { %v661_v39 = vadd.f32 %v856_v38, %v595_v37  ;;  %v652_v40 = vpop.f32.mrb[17].mxu0 }
 0x4ad   :  { %v653_v42 = vadd.f32 %v652_v40, %v587_v36  ;;  %v857_v43 = vpop.f32.mrb[18].mxu0 }
 0x4ae   :  { %952 = vtanh.f32 %v661_v39  ;;  %v655_v45 = vpop.f32.mrb[19].mxu0  ;;  %v664_v46 = vadd.f32 %v857_v43, %v599_v44 }
 0x4af   :  { %954 = vtanh.f32 %v653_v42  ;;  %v656_v47 = vadd.f32 %v655_v45, %v591_v41 }
 0x4b0   :  { %956 = vtanh.f32 %v664_v46 }
 0x4b1   :  { %958 = vtanh.f32 %v656_v47 }
 0x4b8   :  { %v953_v48 = vpop.eup %952 }
 0x4b9   :  { %v955_v49 = vpop.eup %954 }
 0x4ba   :  { %v957_v51 = vpop.eup %956 }
 0x4bb   :  { %v959_v52 = vpop.eup %958  ;;  %v672_v54 = vpack.c.bf16 %v957_v51, %v953_v48 }
 0x4bc   :  { %v671_v55 = vpack.c.bf16 %v959_v52, %v955_v49 }
 0x4bd   :  { %v675_v58 = vunpack.c.l.bf16 %v672_v54  ;;  %v676_v62 = vunpack.c.h.bf16 %v672_v54 }
 0x4be   :  { %v674_v56 = vunpack.c.h.bf16 %v671_v55  ;;  %v673_v57 = vunpack.c.l.bf16 %v671_v55 }
 0x4bf   :  { %v695_v1 = vmul.f32 %v687_v59, %v675_v58  ;;  %v696_v3 = vmul.f32 %v691_v63, %v676_v62 }
 0x4c0   :  { %v694_v60 = vmul.f32 %v683_v50, %v674_v56  ;;  %v693_v61 = vmul.f32 %v679_v53, %v673_v57 }
 0x4c2   :  { %v697_v0 = vadd.f32 %v694_v60, %v693_v61 }
 0x4c4   :  { %v698_v2 = vadd.f32 %v697_v0, %v695_v1 }
 0x4c6   :  { %v699_v4 = vadd.f32 %v698_v2, %v696_v3 }
 0x4c8   :  { %v700_v5 = vrot.slane %v699_v4, 4 }
 0x4ca   :  { %v701_v6 = vadd.f32 %v700_v5, %v699_v4 }
 0x4cc   :  { %v702_v11 = vrot.slane %v701_v6, 2 }
 0x4ce   :  { %v703_v12 = vadd.f32 %v702_v11, %v701_v6 }
 0x4d0   :  { %v704_v13 = vrot.slane %v703_v12, 1 }
 0x4d2   :  { %v705_v15 = vadd.f32 %v704_v13, %v703_v12 }
 0x4d4   :  { %v710_v16 = vadd.f32 %v708_v14, %v705_v15 }
 0x4d6   :  { %v764_v17 = vmul.f32 -1.442695, %v710_v16 }
 0x4d8   :  { %960 = vpow2.f32 %v764_v17 }
 0x4e2   :  { %v961_v18 = vpop.eup %960 }
 0x4e3   :  { %v714_v19 = vadd.f32 1.0, %v961_v18 }
 0x4e5   :  { %962 = vrcp.f32 %v714_v19 }
 0x4ef   :  { %v963_v20 = vpop.eup %962 }
 0x4f0   :  { %717 = vst [vmem:[#allocation2] sm:$0x1] %v963_v20 }
 0x4f1   :  { %975 = shalt.err (!%p972_p4)
}
 0x4f2   :  { %s976_s19 = scalar_lea.hbm %s1190_s5, 16 }
 0x4f3   :  { %p977_p5 = scmp.ne.s32.totalorder %s1190_s5, %s976_s19  ;;  %p980_p6 = scmp.lt.u32.totalorder %s976_s19, %s1190_s5 }
 0x4f5   :  { %p982_p7 = pnand %p980_p6, %p977_p5 }
 0x4f7   :  { %985 = shalt.err (!%p982_p7)
}
 0x4f8   :  { %727 = dma.vmem_to_hbm [thread:$0]  %s725_s15, 16, %s1190_s5, [#allocation3]  }
 0x4f9   :  { %986 = dma.done.wait [#allocation3], 16  }
 0x4fa   :  { %987 = vsyncadd [#allocation3], 4294967280 }
 0x4fb   :  { %731 = vsyncpa [#allocation3], 1 }

</bundles_post_ra>
